<compile_context>
chip_gen: v6e
topology: v6e:2x2x1
jax: 0.10.0
libtpu: 0.0.40
codegen_flags: <defaults>
</compile_context>

<pallas_src>
import jax
import jax.numpy as jnp
from jax.experimental import pallas as pl
from jax.experimental.pallas import tpu as pltpu


def _round_up(x: int, m: int) -> int:
    return ((x + m - 1) // m) * m


def _cdiv(a: int, b: int) -> int:
    return -(-a // b)


def _sublane_multiple(dtype) -> int:
    # 8 rows for 32-bit, 16 for 16-bit, 32 for 8-bit dtypes.
    return max(8, 32 // jnp.dtype(dtype).itemsize)


def _vmem_capacity_bytes() -> int:
    try:
        cap = getattr(pltpu.get_tpu_info(), "vmem_capacity_bytes", None)
        if cap:
            return int(cap)
    except Exception:
        pass
    try:
        kind = jax.devices()[0].device_kind.lower()
        if any(t in kind for t in ("v5", "v6", "trillium")):
            return 128 << 20
    except Exception:
        pass
    return 64 << 20  # conservative (v7x-class)


def _budgets():
    """(4-buffer block budget, vmem_limit cap) derived from chip VMEM size."""
    cap = _vmem_capacity_bytes()
    if cap >= (96 << 20):          # v5e / v6e: 128 MiB physical VMEM
        return 64 << 20, 100 << 20
    return 24 << 20, 40 << 20      # v7x-class: 64 MiB physical VMEM


_MIN_SPLIT_WORK_BYTES = 2 << 20    # start splitting the grid at ~2 MiB of work


def relu_like_kernel(x_ref, alpha_ref, beta_ref, o_ref):
    # Elementwise: z = x * beta ; out = alpha * z * sigmoid(z).
    x = x_ref[...].astype(jnp.float32)          # (tb, tn)
    beta = beta_ref[...].astype(jnp.float32)    # (1, tn) -> broadcasts over rows
    alpha = alpha_ref[...].astype(jnp.float32)  # (1, tn)
    z = x * beta
    # sigmoid via EUP exp + EUP approx reciprocal (VALU slots stay free).
    sig = pl.reciprocal(1.0 + jnp.exp(-z), approx=True)
    o_ref[...] = (alpha * z * sig).astype(o_ref.dtype)


def relu_like(x, alpha, beta):
    """x: (B, N); alpha, beta: (1, N). Returns alpha * SiLU(x * beta)."""
    B0, N0 = x.shape
    assert alpha.shape == (1, N0) and beta.shape == (1, N0)
    itemsize = jnp.dtype(x.dtype).itemsize
    sub = _sublane_multiple(x.dtype)

    # Lane-dense trick for narrow channel dims: fold k rows into the lane axis
    # (contiguous reshape; free under jit) instead of zero-padding to 128 lanes.
    B, N = B0, N0
    folded = False
    if N < 128 and 128 % N == 0:
        k = 128 // N
        if k > 1 and B % k == 0:
            x = x.reshape(B // k, k * N)
            alpha = jnp.tile(alpha, (1, k))
            beta = jnp.tile(beta, (1, k))
            B, N = x.shape
            folded = True

    block_budget, vmem_cap = _budgets()

    # --- channel tiling (only needed for extremely wide N) ---
    if 4 * sub * N * itemsize > block_budget:
        tn = max(128, (block_budget // (4 * sub * itemsize) // 128) * 128)
    else:
        tn = N   # full extent; legal even when N % 128 != 0 (no pad / no slice)
    n_steps = _cdiv(N, tn)

    # --- batch tiling ---
    rows_by_bytes = block_budget // (4 * tn * itemsize)
    tb_cap = max(sub, (rows_by_bytes // sub) * sub)
    work_bytes = B * min(tn, N) * itemsize

    if B < sub:
        tb = B                                  # full-extent block shape is legal
    else:
        B_r = _round_up(B, sub)
        tb = min(tb_cap, (B // sub) * sub)      # sublane-aligned, never > B
        if work_bytes >= _MIN_SPLIT_WORK_BYTES:
            steps = _cdiv(B_r, tb)
            if steps < 4:                       # keep the pipeline busy
                steps = 4
            if steps % 2:                       # even -> balanced 2-TC split
                steps += 1
            tb = min(tb, max(sub, _round_up(_cdiv(B_r, steps), sub)))
        b_steps = _cdiv(B, tb)
        if b_steps > 1 and b_steps % 2 == 1:    # best-effort even grid length
            tb_alt = max(sub, _round_up(_cdiv(B_r, b_steps + 1), sub))
            if tb_alt <= tb and _cdiv(B, tb_alt) % 2 == 0:
                tb = tb_alt
    b_steps = _cdiv(B, tb)

    # If there is real work but it still collapsed to <4 steps (tiny B, wide N),
    # split channels so input prefetch overlaps compute/writeback.
    if (work_bytes >= _MIN_SPLIT_WORK_BYTES and b_steps * n_steps < 4
            and tn == N and N >= 4 * 128):
        tn = max(128, _round_up(_cdiv(N, _cdiv(4, b_steps)), 128))
        n_steps = _cdiv(N, tn)

    block_bytes = 4 * tb * tn * itemsize                    # 2x in + 2x out bufs
    param_bytes = 4 * tn * jnp.dtype(alpha.dtype).itemsize  # alpha + beta
    vmem_limit = int(min(max(block_bytes + param_bytes + (4 << 20), 16 << 20),
                         vmem_cap))

    out = pl.pallas_call(
        relu_like_kernel,
        out_shape=jax.ShapeDtypeStruct((B, N), x.dtype),
        grid_spec=pltpu.PrefetchScalarGridSpec(
            num_scalar_prefetch=0,
            grid=(b_steps, n_steps),
            in_specs=[
                pl.BlockSpec((tb, tn), lambda i, j: (i, j)),   # x tile
                pl.BlockSpec((1, tn), lambda i, j: (0, j)),    # alpha
                pl.BlockSpec((1, tn), lambda i, j: (0, j)),    # beta
            ],
            out_specs=pl.BlockSpec((tb, tn), lambda i, j: (i, j)),
        ),
        compiler_params=pltpu.CompilerParams(
            dimension_semantics=("parallel", "parallel"),
            vmem_limit_bytes=vmem_limit,
        ),
    )(x, alpha, beta)

    if folded:
        out = out.reshape(B0, N0)
    return out


def _reference(x, alpha, beta):
    z = x * beta
    return alpha * (z * jax.nn.sigmoid(z))


if __name__ == "__main__":
    key = jax.random.PRNGKey(0)
    keys = jax.random.split(key, 8)

    def check(b, n_in, n_out, kx, kp=None):
        if kp is None:
            # nn.Module __init__: alpha = ones, beta = ones / n_input_neuron
            alpha = jnp.ones((1, n_out), jnp.float32)
            beta = jnp.ones((1, n_out), jnp.float32) / float(n_in)
        else:
            ka, kb = jax.random.split(kp)
            alpha = 1.0 + 0.1 * jax.random.normal(ka, (1, n_out), jnp.float32)
            beta = jax.random.normal(kb, (1, n_out), jnp.float32) / float(n_in)
        x = jax.random.normal(kx, (b, n_out), dtype=jnp.float32)
        out = jax.block_until_ready(relu_like(x, alpha, beta))
        ref = _reference(x, alpha, beta)
        assert out.shape == (b, n_out)
        assert jnp.allclose(out, ref, atol=1e-4, rtol=5e-3), (
            f"mismatch b={b} n_out={n_out}")

    # Module config (n_input_neuron=64, n_output_neuron=128), small batch.
    check(8, 64, 128, keys[0])
    # Ragged batch + non-128-multiple channels (no wrapper pad/slice path).
    check(10, 32, 192, keys[1], keys[2])
    # Narrow channels -> lane-folding path (64 -> 128 lanes via reshape).
    check(16, 16, 64, keys[3], keys[4])
    # >2 MiB of work -> multi-step, pipelined / 2-TC-sharded grid.
    check(4096, 128, 256, keys[5], keys[6])

    print("KERNEL_OK")
</pallas_src>

<mosaic_0001>
module attributes {stable_mosaic.version = 11 : i64} {
  func.func @relu_like_kernel(%arg0: i32, %arg1: i32, %arg2: memref<8x128xf32, #tpu.memory_space<vmem>>, %arg3: memref<1x128xf32, #tpu.memory_space<vmem>>, %arg4: memref<1x128xf32, #tpu.memory_space<vmem>>, %arg5: memref<8x128xf32, #tpu.memory_space<vmem>>) attributes {dimension_semantics = [#tpu.dimension_semantics<parallel>, #tpu.dimension_semantics<parallel>], iteration_bounds = array<i64: 1, 1>, scalar_prefetch = 0 : i64, scratch_operands = 0 : i64, tpu.core_type = #tpu.core_type<tc>, window_params = [{transform_indices = @transform_0, window_bounds = array<i64: 8, 128>}, {transform_indices = @transform_1, window_bounds = array<i64: 1, 128>}, {transform_indices = @transform_2, window_bounds = array<i64: 1, 128>}, {transform_indices = @transform_3, window_bounds = array<i64: 8, 128>}]} {
    %c0 = arith.constant 0 : index
    %c0_0 = arith.constant 0 : index
    %0 = vector.load %arg2[%c0, %c0_0] : memref<8x128xf32, #tpu.memory_space<vmem>>, vector<8x128xf32>
    %c0_1 = arith.constant 0 : index
    %c0_2 = arith.constant 0 : index
    %1 = vector.load %arg4[%c0_1, %c0_2] : memref<1x128xf32, #tpu.memory_space<vmem>>, vector<1x128xf32>
    %c0_3 = arith.constant 0 : index
    %c0_4 = arith.constant 0 : index
    %2 = vector.load %arg3[%c0_3, %c0_4] : memref<1x128xf32, #tpu.memory_space<vmem>>, vector<1x128xf32>
    %3 = vector.broadcast %1 : vector<1x128xf32> to vector<8x128xf32>
    %4 = arith.mulf %0, %3 : vector<8x128xf32>
    %cst = arith.constant 0.000000e+00 : f32
    %5 = vector.broadcast %cst : f32 to vector<8x128xf32>
    %6 = arith.subf %5, %4 : vector<8x128xf32>
    %7 = math.exp %6 : vector<8x128xf32>
    %cst_5 = arith.constant 1.000000e+00 : f32
    %8 = vector.broadcast %cst_5 : f32 to vector<8x128xf32>
    %9 = arith.addf %8, %7 : vector<8x128xf32>
    %10 = tpu.reciprocal %9 {approx = true} : vector<8x128xf32> -> vector<8x128xf32>
    %11 = vector.broadcast %2 : vector<1x128xf32> to vector<8x128xf32>
    %12 = arith.mulf %11, %4 : vector<8x128xf32>
    %13 = arith.mulf %12, %10 : vector<8x128xf32>
    %c0_6 = arith.constant 0 : index
    %c0_7 = arith.constant 0 : index
    %14 = vector.load %arg5[%c0_6, %c0_7] : memref<8x128xf32, #tpu.memory_space<vmem>>, vector<8x128xf32>
    tpu.vector_store %arg5[%c0_6, %c0_7], %13 {strides = array<i32>} : memref<8x128xf32, #tpu.memory_space<vmem>>, vector<8x128xf32>,
    return
  }
  func.func @transform_0(%arg0: i32, %arg1: i32) -> (i32, i32) {
    %c0_i32 = arith.constant 0 : i32
    return %arg0, %arg1 : i32, i32
  }
  func.func @transform_1(%arg0: i32, %arg1: i32) -> (i32, i32) {
    %c0_i32 = arith.constant 0 : i32
    %c0_i32_0 = arith.constant 0 : i32
    return %c0_i32, %arg1 : i32, i32
  }
  func.func @transform_2(%arg0: i32, %arg1: i32) -> (i32, i32) {
    %c0_i32 = arith.constant 0 : i32
    %c0_i32_0 = arith.constant 0 : i32
    return %c0_i32, %arg1 : i32, i32
  }
  func.func @transform_3(%arg0: i32, %arg1: i32) -> (i32, i32) {
    %c0_i32 = arith.constant 0 : i32
    return %arg0, %arg1 : i32, i32
  }
}

</mosaic_0001>

<bundles_post_ra>
// kernel: tpu_custom_call.1
= control target key start
LH: loop header
LB: loop body
LE: loop exit
PB: predicated region body
PF: predicated region fallthrough
CT: control target
= control target key end

     0   :  { %8 = vsyncpa [#allocation3], 0  ;;  %s152_s0 = inlined_call_operand.hbm [shape: f32[8,128], index: 0, kind: input, shape index: {}]   ;;  %s153_s1 = inlined_call_operand.vmem [shape: f32[1,128], index: 1, kind: input, shape index: {}]   ;;  %s154_s2 = inlined_call_operand.vmem [shape: f32[1,128], index: 2, kind: input, shape index: {}]   ;;  %s155_s3 = inlined_call_operand.hbm [shape: f32[8,128], index: 3, kind: output, shape index: {}]  }
   0x1   :  { %9 = vsyncpa [#allocation4], 0  ;;  %s118_s12 = smov [#allocation2]  }
   0x2   :  { %s16_s13 = sshll.u32 %s118_s12, 4  ;;  %s17_s13 = int_to_ptr.vmem [resolvable:$true] %s16_s13 }
   0x3   :  { %s82_s14 = scalar_lea.vmem %s17_s13, 128  ;;  %p87_p1 = scmp.lt.s32.totalorder %s17_s13, %s17_s13 }
   0x4   :  { %p83_p0 = scmp.ne.s32.totalorder %s17_s13, %s82_s14  ;;  %p88_p2 = scmp.lt.s32.totalorder %s82_s14, %s82_s14 }
   0x6   :  { %p89_p3 = por %p88_p2, %p87_p1 }
   0x8   :  { %p90_p4 = pnand %p89_p3, %p83_p0 }
   0xa   :  { %93 = shalt.err (!%p90_p4)
}
   0xb   :  { %19 = dma.hbm_to_vmem [thread:$0]  %s152_s0, 128, %s17_s13, [#allocation3]  }
   0xc   :  { %114 = dma.done.wait [#allocation3], 128  }
   0xd   :  { %115 = vsyncadd [#allocation3], 4294967168  ;;  %v27_v0 = vld [vmem:[#allocation2] sm:$0xff]  ;;  %s119_s0 = smov [#allocation5]  }
   0xe   :  { %v66_v1 = vld [vmem:[%s154_s2] ss:$0 sm:$0xff]  ;;  %s57_s21 = sshll.u32 %s119_s0, 4  ;;  %s58_s21 = int_to_ptr.vmem [resolvable:$true] %s57_s21 }
   0xf   :  { %v36_v2 = vmul.f32 %v66_v1, %v27_v0  ;;  %v67_v7 = vld [vmem:[%s153_s1] ss:$0 sm:$0xff]  ;;  %s94_s22 = scalar_lea.vmem %s58_s21, 128  ;;  %p99_p6 = scmp.lt.s32.totalorder %s58_s21, %s58_s21 }
  0x10   :  { %p95_p5 = scmp.ne.s32.totalorder %s58_s21, %s94_s22  ;;  %p100_p7 = scmp.lt.s32.totalorder %s94_s22, %s94_s22 }
  0x11   :  { %v37_v3 = vsub.f32 0.0, %v36_v2  ;;  %v48_v8 = vmul.f32 %v67_v7, %v36_v2 }
  0x12   :  { %p101_p8 = por %p100_p7, %p99_p6 }
  0x13   :  { %v38_v4 = vmul.f32 1.442695, %v37_v3 }
  0x14   :  { %p102_p9 = pnand %p101_p8, %p95_p5 }
  0x15   :  { %70 = vpow2.f32 %v38_v4 }
  0x22   :  { %v71_v5 = vpop.eup %70 }
  0x23   :  { %v40_v6 = vadd.f32 1.0, %v71_v5 }
  0x25   :  { %72 = vrcp.f32 %v40_v6 }
  0x32   :  { %v73_v9 = vpop.eup %72 }
  0x33   :  { %v49_v10 = vmul.f32 %v73_v9, %v48_v8 }
  0x35   :  { %50 = vst [vmem:[#allocation5] sm:$0xff] %v49_v10 }
  0x36   :  { %105 = shalt.err (!%p102_p9)
}
  0x37   :  { %60 = dma.vmem_to_hbm [thread:$0]  %s58_s21, 128, %s155_s3, [#allocation4]  }
  0x38   :  { %116 = dma.done.wait [#allocation4], 128  }
  0x39   :  { %117 = vsyncadd [#allocation4], 4294967168 }
  0x3a   :  { %64 = vsyncpa [#allocation3], 1 }
  0x3b   :  { %65 = vsyncpa [#allocation4], 1 }

</bundles_post_ra>
